<compile_context>
chip_gen: v5e
topology: v5e:2x2
jax: 0.10.0
libtpu: 0.0.40
codegen_flags: <defaults>
</compile_context>

<pallas_src>
import functools

import jax
import jax.numpy as jnp
from jax.experimental import pallas as pl
from jax.experimental.pallas import tpu as pltpu


def _round_up(x, m):
    return -(-x // m) * m


def _tpu_vmem_bytes():
    """Best-effort per-core VMEM capacity query; conservative fallback."""
    try:
        info = pltpu.get_tpu_info()
        for attr in ("vmem_capacity_bytes", "vmem_size_bytes", "vmem_bytes"):
            v = getattr(info, attr, None)
            if v:
                return int(v)
    except Exception:
        pass
    return 64 * 1024 * 1024  # v7x-sized conservative default


def _choose_tiling(n, p, itemsize, budget_bytes):
    """Pick (tile_n, num_tiles, pack) for the batch axis.

    tile_n is a multiple of the dtype's sublane packing, sized so one native
    logits tile stays within budget_bytes, capped at 8192 rows, and further
    capped so the grid has at least two steps whenever the batch allows it.
    """
    pack = max(8, 32 // max(1, itemsize))          # 8 f32 / 16 bf16 / 32 int8
    tile = budget_bytes // max(1, p * itemsize)
    tile = max(pack, min(8192, (tile // pack) * pack))
    # Guarantee >= 2 grid steps (v7x megacore sharding + pipelining) if possible.
    tile = min(tile, _round_up(max((n + 1) // 2, 1), pack))
    num_tiles = max(1, -(-n // tile))
    # Re-balance so the last tile is not mostly padding.
    tile = _round_up(-(-n // num_tiles), pack)
    return tile, num_tiles, pack


def _focal_loss_kernel(logits_ref, target_ref, wt_ref, fw_ref, loss_ref, *,
                       attenuate):
    xl = logits_ref[...]                                  # [T, P] native dtype
    t = target_ref[...]                                   # [T, 1] int32
    w_t = wt_ref[...]                                     # [T, 1] f32 (0 on pad rows)

    # Row max and one-hot gather of the target logit in the *native* dtype
    # (exact: one element per row is selected; bf16->f32 is lossless).
    # Note: out-of-range targets silently give x_t = 0 (torch.gather errors).
    col = jax.lax.broadcasted_iota(jnp.int32, xl.shape, 1)
    onehot = col == t                                      # [T, P]
    m = jnp.max(xl, axis=1, keepdims=True).astype(jnp.float32)            # [T, 1]
    x_t = jnp.sum(jnp.where(onehot, xl, 0), axis=1,
                  keepdims=True).astype(jnp.float32)                       # [T, 1]

    # Numerically-stable softmax denominator in f32 (exp rides the EUP).
    z = xl.astype(jnp.float32) - m                         # [T, P]
    s = jnp.sum(jnp.exp(z), axis=1, keepdims=True)         # [T, 1]

    logp_t = (x_t - m) - jnp.log(s)                        # log_softmax at target
    p_t = jnp.exp(logp_t)                                  # softmax at target

    one_minus = 1.0 - p_t
    if attenuate == 2.0:
        focal = one_minus * one_minus
    elif attenuate == 1.0:
        focal = one_minus
    else:
        focal = jnp.power(one_minus, jnp.float32(attenuate))
    focal_w = w_t * focal                                  # [T, 1]

    fw_ref[...] = focal_w
    # Per-tile partial loss sum (padded rows have w_t == 0 -> contribute 0);
    # the batch mean is finished in the wrapper.  Writing one scalar per tile
    # avoids an N-sized loss writeback and the follow-up XLA reduction.
    part = jnp.sum(-focal_w * logp_t, axis=0, keepdims=True)   # (1, 1)
    loss_ref[...] = part.reshape(1, 1, 1)


def focal_loss(logits, target, weight=None, attenuate=2.0):
    """logits: [N, P] float (any dtype), target: [N] int, weight: [P] or None.

    Returns (loss [1] f32, focal_weight [N, 1] f32) matching the PyTorch module.
    """
    N, P = logits.shape
    target = target.astype(jnp.int32)
    itemsize = jnp.dtype(logits.dtype).itemsize

    # Per-sample class weight gathered in the wrapper (tiny [N] gather).
    if weight is None:
        w_t = jnp.ones((N,), dtype=jnp.float32)
    else:
        w_t = weight.astype(jnp.float32)[target]

    # Generation-aware tile / VMEM budget.
    vmem_cap = _tpu_vmem_bytes()
    small_vmem = vmem_cap < 100 * 1024 * 1024              # v7x-class (64 MiB/TC)
    buf_budget = (6 if small_vmem else 8) * 1024 * 1024
    vmem_limit = (40 if small_vmem else 64) * 1024 * 1024

    tile_n, num_tiles, _pack = _choose_tiling(N, P, itemsize, buf_budget)
    n_pad = tile_n * num_tiles
    pad = n_pad - N
    if pad:
        logits = jnp.pad(logits, ((0, pad), (0, 0)))
        target = jnp.pad(target, (0, pad))
        w_t = jnp.pad(w_t, (0, pad))                       # zero weight -> zero loss

    target_2d = target.reshape(n_pad, 1)
    w_t_2d = w_t.reshape(n_pad, 1)
    grid = (num_tiles,)

    kernel = functools.partial(_focal_loss_kernel, attenuate=float(attenuate))

    cost = pl.CostEstimate(
        flops=int(8 * n_pad * P + 10 * n_pad),
        transcendentals=int(n_pad * P + 2 * n_pad),
        bytes_accessed=int(n_pad * P * itemsize + 3 * n_pad * 4 + num_tiles * 4),
    )

    fw, loss_parts = pl.pallas_call(
        kernel,
        out_shape=(
            jax.ShapeDtypeStruct((n_pad, 1), jnp.float32),         # focal weight
            jax.ShapeDtypeStruct((num_tiles, 1, 1), jnp.float32),  # per-tile loss sums
        ),
        grid=grid,
        in_specs=[
            pl.BlockSpec((tile_n, P), lambda i: (i, 0)),           # logits (native dtype)
            pl.BlockSpec((tile_n, 1), lambda i: (i, 0)),           # target
            pl.BlockSpec((tile_n, 1), lambda i: (i, 0)),           # weight[target]
        ],
        out_specs=(
            pl.BlockSpec((tile_n, 1), lambda i: (i, 0)),
            pl.BlockSpec((1, 1, 1), lambda i: (i, 0, 0)),
        ),
        compiler_params=pltpu.CompilerParams(
            dimension_semantics=("parallel",),
            vmem_limit_bytes=vmem_limit,
        ),
        cost_estimate=cost,
    )(logits, target_2d, w_t_2d)

    loss = jnp.sum(loss_parts) / jnp.float32(N)
    return loss.reshape(1), fw[:N]


def _focal_loss_ref(logits, target, weight=None, attenuate=2.0):
    logits = logits.astype(jnp.float32)
    soft = jax.nn.softmax(logits, axis=1)
    logsoft = jax.nn.log_softmax(logits, axis=1)
    N = target.shape[0]
    p_t = jnp.take_along_axis(soft, target.reshape(N, 1), axis=1)
    logp_t = jnp.take_along_axis(logsoft, target.reshape(N, 1), axis=1)
    if weight is None:
        w_t = jnp.ones((N, 1), dtype=jnp.float32)
    else:
        w_t = jnp.take_along_axis(
            jnp.broadcast_to(weight.reshape(1, -1).astype(jnp.float32),
                             logits.shape),
            target.reshape(N, 1), axis=1)
    fw = w_t * jnp.power(1.0 - p_t, attenuate)
    loss = jnp.mean(-fw * logp_t, axis=0)
    return loss, fw


if __name__ == "__main__":
    key = jax.random.PRNGKey(0)
    k1, k2, k3, k4, k5 = jax.random.split(key, 5)

    # Small shapes; N not a multiple of 8 to exercise padding + multi-tile grid.
    N, P = 10, 16
    logits = jax.random.normal(k1, (N, P), dtype=jnp.float32) * 2.0
    target = jax.random.randint(k2, (N,), 0, P, dtype=jnp.int32)
    class_weight = jax.random.uniform(k3, (P,), dtype=jnp.float32) + 0.5

    # weight=None case (f32 logits)
    loss, fw = focal_loss(logits, target, weight=None)
    jax.block_until_ready((loss, fw))
    loss_ref, fw_ref = _focal_loss_ref(logits, target, weight=None)
    assert jnp.allclose(loss, loss_ref, atol=1e-5, rtol=1e-5)
    assert jnp.allclose(fw, fw_ref, atol=1e-5, rtol=1e-5)

    # weight=[P] case (f32 logits)
    loss_w, fw_w = focal_loss(logits, target, weight=class_weight)
    jax.block_until_ready((loss_w, fw_w))
    loss_wr, fw_wr = _focal_loss_ref(logits, target, weight=class_weight)
    assert jnp.allclose(loss_w, loss_wr, atol=1e-5, rtol=1e-5)
    assert jnp.allclose(fw_w, fw_wr, atol=1e-5, rtol=1e-5)

    # bf16 logits exercise the native-dtype max / one-hot gather path.
    Nb = 24
    logits_bf = (jax.random.normal(k4, (Nb, P), dtype=jnp.float32) * 2.0
                 ).astype(jnp.bfloat16)
    target_bf = jax.random.randint(k5, (Nb,), 0, P, dtype=jnp.int32)
    loss_b, fw_b = focal_loss(logits_bf, target_bf, weight=class_weight)
    jax.block_until_ready((loss_b, fw_b))
    loss_br, fw_br = _focal_loss_ref(logits_bf, target_bf, weight=class_weight)
    assert jnp.allclose(loss_b, loss_br, atol=1e-4, rtol=1e-4)
    assert jnp.allclose(fw_b, fw_br, atol=1e-4, rtol=1e-4)

    print("KERNEL_OK")
</pallas_src>

<mosaic_0001>
module attributes {stable_mosaic.version = 11 : i64} {
  func.func @_focal_loss_kernel(%arg0: i32, %arg1: memref<8x16xf32, #tpu.memory_space<vmem>>, %arg2: memref<8x1xi32, #tpu.memory_space<vmem>>, %arg3: memref<8x1xf32, #tpu.memory_space<vmem>>, %arg4: memref<8x1xf32, #tpu.memory_space<vmem>>, %arg5: memref<1x1x1xf32, #tpu.memory_space<vmem>>) attributes {dimension_semantics = [#tpu.dimension_semantics<parallel>], iteration_bounds = array<i64: 2>, scalar_prefetch = 0 : i64, scratch_operands = 0 : i64, tpu.core_type = #tpu.core_type<tc>, window_params = [{transform_indices = @transform_0, window_bounds = array<i64: 8, 16>}, {transform_indices = @transform_1, window_bounds = array<i64: 8, 1>}, {transform_indices = @transform_2, window_bounds = array<i64: 8, 1>}, {transform_indices = @transform_3, window_bounds = array<i64: 8, 1>}, {transform_indices = @transform_4, window_bounds = array<i64: 1, 1, 1>}]} {
    %c0 = arith.constant 0 : index
    %c0_0 = arith.constant 0 : index
    %0 = vector.load %arg1[%c0, %c0_0] : memref<8x16xf32, #tpu.memory_space<vmem>>, vector<8x16xf32>
    %c0_1 = arith.constant 0 : index
    %c0_2 = arith.constant 0 : index
    %1 = vector.load %arg2[%c0_1, %c0_2] : memref<8x1xi32, #tpu.memory_space<vmem>>, vector<8x1xi32>
    %c0_3 = arith.constant 0 : index
    %c0_4 = arith.constant 0 : index
    %2 = vector.load %arg3[%c0_3, %c0_4] : memref<8x1xf32, #tpu.memory_space<vmem>>, vector<8x1xf32>
    %3 = tpu.iota {dimensions = array<i32: 1>} : vector<8x16xi32>
    %4 = vector.broadcast %1 : vector<8x1xi32> to vector<8x16xi32>
    %5 = arith.cmpi eq, %3, %4 : vector<8x16xi32>
    %cst = arith.constant dense<0xFF800000> : vector<8xf32>
    %6 = vector.multi_reduction <maximumf>, %0, %cst [1] : vector<8x16xf32> to vector<8xf32>
    %7 = vector.shape_cast %6 : vector<8xf32> to vector<8x1xf32>
    %c0_i32 = arith.constant 0 : i32
    %8 = arith.sitofp %c0_i32 : i32 to f32
    %9 = vector.broadcast %8 : f32 to vector<8x16xf32>
    %10 = arith.select %5, %0, %9 : vector<8x16xi1>, vector<8x16xf32>
    %cst_5 = arith.constant dense<0.000000e+00> : vector<8xf32>
    %11 = vector.multi_reduction <add>, %10, %cst_5 [1] : vector<8x16xf32> to vector<8xf32>
    %12 = vector.shape_cast %11 : vector<8xf32> to vector<8x1xf32>
    %13 = vector.broadcast %7 : vector<8x1xf32> to vector<8x16xf32>
    %14 = arith.subf %0, %13 : vector<8x16xf32>
    %15 = math.exp %14 : vector<8x16xf32>
    %cst_6 = arith.constant dense<0.000000e+00> : vector<8xf32>
    %16 = vector.multi_reduction <add>, %15, %cst_6 [1] : vector<8x16xf32> to vector<8xf32>
    %17 = vector.shape_cast %16 : vector<8xf32> to vector<8x1xf32>
    %18 = arith.subf %12, %7 : vector<8x1xf32>
    %19 = math.log %17 : vector<8x1xf32>
    %20 = arith.subf %18, %19 : vector<8x1xf32>
    %21 = math.exp %20 : vector<8x1xf32>
    %cst_7 = arith.constant 1.000000e+00 : f32
    %22 = vector.broadcast %cst_7 : f32 to vector<8x1xf32>
    %23 = arith.subf %22, %21 : vector<8x1xf32>
    %24 = arith.mulf %23, %23 : vector<8x1xf32>
    %25 = arith.mulf %2, %24 : vector<8x1xf32>
    %c0_8 = arith.constant 0 : index
    %c0_9 = arith.constant 0 : index
    %26 = vector.load %arg4[%c0_8, %c0_9] : memref<8x1xf32, #tpu.memory_space<vmem>>, vector<8x1xf32>
    tpu.vector_store %arg4[%c0_8, %c0_9], %25 {strides = array<i32>} : memref<8x1xf32, #tpu.memory_space<vmem>>, vector<8x1xf32>,
    %cst_10 = arith.constant 0.000000e+00 : f32
    %27 = vector.broadcast %cst_10 : f32 to vector<8x1xf32>
    %28 = arith.subf %27, %25 : vector<8x1xf32>
    %29 = arith.mulf %28, %20 : vector<8x1xf32>
    %cst_11 = arith.constant dense<0.000000e+00> : vector<1xf32>
    %30 = vector.multi_reduction <add>, %29, %cst_11 [0] : vector<8x1xf32> to vector<1xf32>
    %31 = vector.shape_cast %30 : vector<1xf32> to vector<1x1xf32>
    %32 = vector.shape_cast %31 : vector<1x1xf32> to vector<1x1x1xf32>
    %c0_12 = arith.constant 0 : index
    %c0_13 = arith.constant 0 : index
    %c0_14 = arith.constant 0 : index
    %33 = vector.load %arg5[%c0_12, %c0_13, %c0_14] : memref<1x1x1xf32, #tpu.memory_space<vmem>>, vector<1x1x1xf32>
    tpu.vector_store %arg5[%c0_12, %c0_13, %c0_14], %32 {strides = array<i32>} : memref<1x1x1xf32, #tpu.memory_space<vmem>>, vector<1x1x1xf32>,
    return
  }
  func.func @transform_0(%arg0: i32) -> (i32, i32) {
    %c0_i32 = arith.constant 0 : i32
    %c0_i32_0 = arith.constant 0 : i32
    return %arg0, %c0_i32 : i32, i32
  }
  func.func @transform_1(%arg0: i32) -> (i32, i32) {
    %c0_i32 = arith.constant 0 : i32
    %c0_i32_0 = arith.constant 0 : i32
    return %arg0, %c0_i32 : i32, i32
  }
  func.func @transform_2(%arg0: i32) -> (i32, i32) {
    %c0_i32 = arith.constant 0 : i32
    %c0_i32_0 = arith.constant 0 : i32
    return %arg0, %c0_i32 : i32, i32
  }
  func.func @transform_3(%arg0: i32) -> (i32, i32) {
    %c0_i32 = arith.constant 0 : i32
    %c0_i32_0 = arith.constant 0 : i32
    return %arg0, %c0_i32 : i32, i32
  }
  func.func @transform_4(%arg0: i32) -> (i32, i32, i32) {
    %c0_i32 = arith.constant 0 : i32
    %c0_i32_0 = arith.constant 0 : i32
    %c0_i32_1 = arith.constant 0 : i32
    return %arg0, %c0_i32, %c0_i32_0 : i32, i32, i32
  }
}

</mosaic_0001>

<bundles_post_ra>
// kernel: tpu_custom_call.1
= control target key start
LH: loop header
LB: loop body
LE: loop exit
PB: predicated region body
PF: predicated region fallthrough
CT: control target
= control target key end

     0   :  { %s444_s15 = smov 0   ;;  %s483_s0 = inlined_call_operand.vmem [shape: f32[16,16], index: 0, kind: input, shape index: {}]   ;;  %s484_s1 = inlined_call_operand.vmem [shape: s32[16,1], index: 1, kind: input, shape index: {}]   ;;  %s485_s2 = inlined_call_operand.vmem [shape: f32[16,1], index: 2, kind: input, shape index: {}]   ;;  %s486_s3 = inlined_call_operand.vmem [shape: f32[16,1], index: 3, kind: output, shape index: {0}]   ;;  %s487_s4 = inlined_call_operand.vmem [shape: f32[2,1,1], index: 4, kind: output, shape index: {1}]  }
   0x1 LB: > { %s383_s16 = sadd.s32 4294967295, %s416_s15   ;;  %p387_p0 = scmp.ge.s32.totalorder %s416_s15, 1  ;;  %s416_s15 = sphi %s444_s15, %s15_s15  }
   0x2   : > { %p182_p1 = scmp.lt.s32.totalorder %s416_s15, 3 }
   0x4   : > { %p183_p2 = pnand %p387_p0, %p182_p1 }
   0x5   : > { %p217_p3 = scmp.lt.s32.totalorder (!%p183_p2), %s383_s16, 1 }
   0x6   : > { %186 = sbr.rel (%p183_p2) target bundleno = 307 (0x133), region = 32 }
   0xb   : > { %v418_v0 = vmov 0   ;;  %s489_s16 = smov (!%p217_p3, %s383_s16), 1  ;;  %vm245_vm0 = vcmask 130048   ;;  %v239_v9 = vlaneseq  ;;  %vm268_vm2 = vcmask 7168  }
   0xc   : > { %403 = vset.pattern.permute.xlu0 %v418_v0  ;;  %s455_s17 = sshll.u32 %s489_s16, 3  ;;  %s235_s6 = scalar_lea.vmem %s487_s4, %s489_s16  ;;  %vm279_vm3 = vcmask 0  }
   0xd   : > { %s220_s20 = scalar_lea.vmem %s483_s0, %s455_s17  ;;  %s224_s23 = scalar_lea.vmem %s484_s1, %s455_s17  ;;  %v240_v10 = vand.u32 127, %v239_v9 }
   0xe   : > { %v236_v1 = vld [vmem:[%s220_s20] sm:$0xff]  ;;  %s228_s26 = scalar_lea.vmem %s485_s2, %s455_s17  ;;  %s232_s29 = scalar_lea.vmem %s486_s3, %s455_s17 }
   0xf   : > { %v246_v2 = vsel %vm245_vm0, %v236_v1, -inf  ;;  %v237_v3 = vld [vmem:[%s224_s23] sm:$0xff] }
  0x10   : > { %247 = vmax.xlane.f32.xlu0 %v246_v2  ;;  %v238_v23 = vld [vmem:[%s228_s26] sm:$0xff] }
  0x24   : > { %242 = vperm.xlu0 %403, %v237_v3  }
  0x83   : > { %v248_v4 = vpop.xlane.xlu0 %247 }
  0x84   : > { %v253_v5 = vsub.f32 %v236_v1, %v248_v4 }
  0x86   : > { %v254_v6 = vmul.f32 1.442695, %v253_v5 }
  0x88   : > { %404 = vpow2.f32 %v254_v6 }
  0x8e   : > { %v405_v7 = vpop.eup %404 }
  0x8f   : > { %v256_v8 = vsel %vm245_vm0, %v405_v7, 0.0 }
  0x90   : > { %257 = vadd.xlane.f32.xlu1 %v256_v8 }
  0x96   : > { %v243_v11 = vpop.permute.xlu0 %242 }
  0x97   : > { %vm244_vm1 = vcmp.eq.s32.totalorder %v240_v10, %v243_v11 }
  0x98   : > { %v249_v12 = vsel %vm244_vm1, %v236_v1, 0.0 }
  0x99   : > { %v250_v13 = vsel %vm245_vm0, %v249_v12, 0.0 }
  0x9a   : > { %251 = vadd.xlane.f32.xlu1 %v250_v13 }
 0x103   : > { %v258_v14 = vpop.xlane.xlu1 %257 }
 0x104   : > { %406 = vlog2.f32 %v258_v14 }
 0x10a   : > { %v407_v15 = vpop.eup %406 }
 0x10b   : > { %v261_v17 = vmul.f32 0.6931472, %v407_v15 }
 0x10d   : > { %v252_v16 = vpop.xlane.xlu1 %251 }
 0x10e   : > { %v259_v18 = vsub.f32 %v252_v16, %v248_v4 }
 0x110   : > { %v262_v19 = vsub.f32 %v259_v18, %v261_v17 }
 0x112   : > { %v263_v20 = vmul.f32 1.442695, %v262_v19 }
 0x114   : > { %408 = vpow2.f32 %v263_v20 }
 0x11a   : > { %v409_v21 = vpop.eup %408 }
 0x11b   : > { %v265_v22 = vsub.f32 1.0, %v409_v21 }
 0x11d   : > { %v266_v24 = vmul.f32 %v265_v22, %v265_v22 }
 0x11f   : > { %v267_v25 = vmul.f32 %v266_v24, %v238_v23 }
 0x121   : > { %269 = vst.msk [vmem:[%s232_s29] sm:$0xff] %vm268_vm2, %v267_v25  ;;  %v270_v26 = vsub.f32 0.0, %v267_v25 }
 0x123   : > { %v271_v27 = vmul.f32 %v270_v26, %v262_v19 }
 0x125   : > { %v272_v28 = vsel %vm268_vm2, %v271_v27, 0.0 }
 0x126   : > { %v273_v29 = vrot.slane %v272_v28, 4 }
 0x128   : > { %v274_v30 = vadd.f32 %v273_v29, %v272_v28 }
 0x12a   : > { %v275_v31 = vrot.slane %v274_v30, 2 }
 0x12c   : > { %v276_v32 = vadd.f32 %v275_v31, %v274_v30 }
 0x12e   : > { %v277_v33 = vrot.slane %v276_v32, 1 }
 0x130   : > { %v278_v34 = vadd.f32 %v277_v33, %v276_v32 }
 0x132   : > { %280 = vst.msk [vmem:[%s235_s6] sm:$0x1] %vm279_vm3, %v278_v34 }
 0x133 PF: > { %s15_s15 = sadd.s32 1, %s416_s15  }
 0x134   : > { %p12_p4 = scmp.ge.s32.totalorder %s15_s15, 4  }
 0x136   :  { %14 = sbr.rel (!%p12_p4) target bundleno = 1 (0x1), region = 80 }

</bundles_post_ra>
